<compile_context>
chip_gen: v6e
topology: v6e:2x2x1
jax: 0.10.0
libtpu: 0.0.40
codegen_flags: <defaults>
</compile_context>

<pallas_src>
import jax
import jax.numpy as jnp
from jax.experimental import pallas as pl
from jax.experimental.pallas import tpu as pltpu


def _round_up(x, m):
    return ((x + m - 1) // m) * m


def _cdiv(a, b):
    return (a + b - 1) // b


def _vmem_capacity_bytes():
    try:
        return int(pltpu.get_tpu_info().vmem_capacity_bytes)
    except Exception:
        return 64 * 1024 * 1024  # conservative fallback = v7x per-TC VMEM


def _mlp_kernel(x_ref, w1_ref, b1_ref, w3_ref, b3_ref, o_ref, acc_ref):
    """One (batch_tile, h_tile) step of: relu(x @ W1 + b1) @ W3 + b3."""
    h_idx = pl.program_id(1)

    @pl.when(h_idx == 0)
    def _():
        acc_ref[...] = jnp.zeros_like(acc_ref)

    # Cast x to bf16 in-kernel (VPU) -> MXU feed; accumulate in f32.
    x = x_ref[...].astype(jnp.bfloat16)                                 # (bt, D)
    h = jnp.dot(x, w1_ref[...], preferred_element_type=jnp.float32)      # (bt, ht) f32
    h = jnp.maximum(h + b1_ref[...], 0.0)                                # bias + ReLU
    acc_ref[...] += jnp.dot(h.astype(jnp.bfloat16), w3_ref[...],
                            preferred_element_type=jnp.float32)          # (bt, C_pad)

    @pl.when(h_idx == pl.num_programs(1) - 1)
    def _():
        # Lane-dense full store (C padded to a multiple of 128 in prepare_params).
        o_ref[...] = (acc_ref[...] + b3_ref[...]).astype(o_ref.dtype)


def prepare_params(w1, b1, w3, b3, *, h_chunk=512):
    """One-time parameter prep (call OUTSIDE the per-step hot path).

    w1: (D, H), b1: (H,) or (1, H), w3: (H, C), b3: (C,) or (1, C).
    Returns bf16 weights / f32 biases with the hidden dim padded to a multiple of the
    h tile and the class dim padded to a multiple of 128 (lane-dense output)."""
    D, H = w1.shape
    C = w3.shape[1]
    C_pad = _round_up(C, 128)

    if H <= 1024:
        h_tile, H_pad = H, H            # single hidden chunk, no (8,128) constraint
    else:
        h_tile = h_chunk                # stream W1/W3 in h_tile-wide chunks
        h_tile = max(128, _round_up(h_tile, 128))
        H_pad = _round_up(H, h_tile)

    b1 = jnp.asarray(b1).reshape(1, -1)
    b3 = jnp.asarray(b3).reshape(1, -1)
    w1_p = jnp.pad(w1, ((0, 0), (0, H_pad - H))).astype(jnp.bfloat16)
    b1_p = jnp.pad(b1, ((0, 0), (0, H_pad - H))).astype(jnp.float32)
    w3_p = jnp.pad(w3, ((0, H_pad - H), (0, C_pad - C))).astype(jnp.bfloat16)
    b3_p = jnp.pad(b3, ((0, 0), (0, C_pad - C))).astype(jnp.float32)
    return dict(w1=w1_p, b1=b1_p, w3=w3_p, b3=b3_p, h_tile=int(h_tile), class_num=int(C))


def mlps_forward(x, params, *, batch_tile=None):
    """x: (B, D) float; params from prepare_params().  Returns (B, class_num) f32."""
    w1, b1, w3, b3 = params["w1"], params["b1"], params["w3"], params["b3"]
    h_tile = params["h_tile"]
    C = params["class_num"]

    B, D = x.shape
    H_pad = w1.shape[1]
    C_pad = w3.shape[1]
    assert w1.shape[0] == D
    nh = H_pad // h_tile

    # ---- batch tile: multiple of 16 (bf16 sublane packing); >=2 grid steps for
    # B >= 64 so the "parallel" batch axis can shard across v7x's two TensorCores.
    if batch_tile is None:
        if B <= 32:
            batch_tile = _round_up(B, 16)
        elif B <= 512:
            batch_tile = _round_up(_cdiv(B, 2), 16)
        else:
            batch_tile = 256
    batch_tile = max(16, _round_up(batch_tile, 16))
    B_pad = _round_up(B, batch_tile)
    nb = B_pad // batch_tile

    x_p = x if B_pad == B else jnp.pad(x, ((0, B_pad - B), (0, 0)))

    # ---- VMEM budget from actual buffer counts, capped at ~85% of physical VMEM
    # (≈54 MiB on v7x, ≈108 MiB on v5e/v6e) to leave compiler-scratch headroom.
    n_wbuf = 1 if nh == 1 else 2
    est_bytes = (
        2 * batch_tile * D * x_p.dtype.itemsize            # x tile, double-buffered
        + n_wbuf * (D * h_tile * 2 + h_tile * 4 + h_tile * C_pad * 2)  # W1/b1/W3
        + C_pad * 4                                         # b3 (single-buffered)
        + 2 * batch_tile * C_pad * 4                        # out tile, double-buffered
        + batch_tile * C_pad * 4                            # f32 accumulator scratch
        + batch_tile * h_tile * 6                           # live hidden (f32 + bf16)
    )
    vmem_cap = int(_vmem_capacity_bytes() * 0.85)
    vmem_limit = int(min(max(int(est_bytes * 1.3), 32 * 1024 * 1024), vmem_cap))

    # Resident (constant-index) blocks get a single buffer; streamed blocks keep the
    # default double-buffering so the h-chunk DMA overlaps compute.
    def _wspec(shape, index_map):
        if nh == 1:
            return pl.BlockSpec(shape, index_map, pipeline_mode=pl.Buffered(1))
        return pl.BlockSpec(shape, index_map)

    out_pad = pl.pallas_call(
        _mlp_kernel,
        out_shape=jax.ShapeDtypeStruct((B_pad, C_pad), jnp.float32),
        grid_spec=pltpu.PrefetchScalarGridSpec(
            num_scalar_prefetch=0,
            grid=(nb, nh),
            in_specs=[
                pl.BlockSpec((batch_tile, D), lambda i, h: (i, 0)),        # x tile
                _wspec((D, h_tile), lambda i, h: (0, h)),                  # W1 chunk
                _wspec((1, h_tile), lambda i, h: (0, h)),                  # b1 chunk
                _wspec((h_tile, C_pad), lambda i, h: (h, 0)),              # W3 chunk
                pl.BlockSpec((1, C_pad), lambda i, h: (0, 0),
                             pipeline_mode=pl.Buffered(1)),                # b3 resident
            ],
            out_specs=pl.BlockSpec((batch_tile, C_pad), lambda i, h: (i, 0)),
            scratch_shapes=[pltpu.VMEM((batch_tile, C_pad), jnp.float32)],
        ),
        compiler_params=pltpu.CompilerParams(
            dimension_semantics=("parallel", "arbitrary"),
            vmem_limit_bytes=vmem_limit,
        ),
    )(x_p, w1, b1, w3, b3)

    # TODO(synk): downstream consumers that tolerate padded/bf16 outputs can skip this
    # slice (and use a bf16 out_shape) to save the extra HBM pass.
    return out_pad[:B, :C]


def init_params(key, input_dim, midnum, class_num):
    """torch.nn.Linear-style init: U(-1/sqrt(fan_in), 1/sqrt(fan_in)).
    Weights are returned already transposed to (in, out)."""
    k1, k2, k3, k4 = jax.random.split(key, 4)
    lim1 = 1.0 / jnp.sqrt(jnp.float32(input_dim))
    lim3 = 1.0 / jnp.sqrt(jnp.float32(midnum))
    w1 = jax.random.uniform(k1, (input_dim, midnum), jnp.float32, -lim1, lim1)
    b1 = jax.random.uniform(k2, (1, midnum), jnp.float32, -lim1, lim1)
    w3 = jax.random.uniform(k3, (midnum, class_num), jnp.float32, -lim3, lim3)
    b3 = jax.random.uniform(k4, (1, class_num), jnp.float32, -lim3, lim3)
    # mlp2 params exist in the PyTorch module but are never used in forward; skipped.
    return w1, b1, w3, b3


if __name__ == "__main__":
    B, D, H, C = 16, 32, 128, 3          # batch, input_dim, midnum, class_num
    key = jax.random.PRNGKey(0)
    kx, kp = jax.random.split(key)
    x = jax.random.normal(kx, (B, D), jnp.float32)
    w1, b1, w3, b3 = init_params(kp, D, H, C)

    params = prepare_params(w1, b1, w3, b3)   # one-time cast/pad (outside hot path)
    out = mlps_forward(x, params)
    out = jax.block_until_ready(out)

    # Plain-JAX f32 reference; kernel feeds the MXU in bf16 with f32 accumulation,
    # so tolerance is loosened accordingly.
    ref = jnp.maximum(x @ w1 + b1, 0.0) @ w3 + b3
    assert out.shape == (B, C)
    assert jnp.allclose(out, ref, atol=2e-2, rtol=2e-2), (
        float(jnp.max(jnp.abs(out - ref))))

    print("KERNEL_OK")
</pallas_src>

<mosaic_0001>
module attributes {stable_mosaic.version = 11 : i64} {
  func.func @_mlp_kernel(%arg0: i32, %arg1: i32, %arg2: memref<16x32xf32, #tpu.memory_space<vmem>>, %arg3: memref<32x128xbf16, #tpu.memory_space<vmem>>, %arg4: memref<1x128xf32, #tpu.memory_space<vmem>>, %arg5: memref<128x128xbf16, #tpu.memory_space<vmem>>, %arg6: memref<1x128xf32, #tpu.memory_space<vmem>>, %arg7: memref<16x128xf32, #tpu.memory_space<vmem>>, %arg8: memref<16x128xf32, #tpu.memory_space<vmem>>) attributes {dimension_semantics = [#tpu.dimension_semantics<parallel>, #tpu.dimension_semantics<arbitrary>], iteration_bounds = array<i64: 1, 1>, scalar_prefetch = 0 : i64, scratch_operands = 1 : i64, tpu.core_type = #tpu.core_type<tc>, window_params = [{transform_indices = @transform_0, window_bounds = array<i64: 16, 32>}, {pipeline_mode = #tpu.pipeline_mode<synchronous>, transform_indices = @transform_1, window_bounds = array<i64: 32, 128>}, {pipeline_mode = #tpu.pipeline_mode<synchronous>, transform_indices = @transform_2, window_bounds = array<i64: 1, 128>}, {pipeline_mode = #tpu.pipeline_mode<synchronous>, transform_indices = @transform_3, window_bounds = array<i64: 128, 128>}, {pipeline_mode = #tpu.pipeline_mode<synchronous>, transform_indices = @transform_4, window_bounds = array<i64: 1, 128>}, {transform_indices = @transform_5, window_bounds = array<i64: 16, 128>}]} {
    %c0_i32 = arith.constant 0 : i32
    %0 = arith.cmpi eq, %arg1, %c0_i32 : i32
    %1 = arith.extui %0 : i1 to i32
    %c0_i32_0 = arith.constant 0 : i32
    %2 = arith.cmpi ne, %1, %c0_i32_0 : i32
    scf.if %2 {
      %cst_16 = arith.constant 0.000000e+00 : f32
      %21 = vector.broadcast %cst_16 : f32 to vector<16x128xf32>
      %c0_17 = arith.constant 0 : index
      %c0_18 = arith.constant 0 : index
      %22 = vector.load %arg8[%c0_17, %c0_18] : memref<16x128xf32, #tpu.memory_space<vmem>>, vector<16x128xf32>
      tpu.vector_store %arg8[%c0_17, %c0_18], %21 {strides = array<i32>} : memref<16x128xf32, #tpu.memory_space<vmem>>, vector<16x128xf32>,
    } else {
    }
    %c0 = arith.constant 0 : index
    %c0_1 = arith.constant 0 : index
    %3 = vector.load %arg2[%c0, %c0_1] : memref<16x32xf32, #tpu.memory_space<vmem>>, vector<16x32xf32>
    %4 = arith.truncf %3 : vector<16x32xf32> to vector<16x32xbf16>
    %c0_2 = arith.constant 0 : index
    %c0_3 = arith.constant 0 : index
    %5 = vector.load %arg3[%c0_2, %c0_3] : memref<32x128xbf16, #tpu.memory_space<vmem>>, vector<32x128xbf16>
    %cst = arith.constant dense<0.000000e+00> : vector<16x128xf32>
    %6 = tpu.matmul %4, %5, %cst {dimension_numbers = #tpu.dot_dimension_numbers<[1], [0], [0], [1], [0, 0, 1, 1], [], []>} : vector<16x32xbf16>, vector<32x128xbf16>, vector<16x128xf32> -> vector<16x128xf32>
    %c0_4 = arith.constant 0 : index
    %c0_5 = arith.constant 0 : index
    %7 = vector.load %arg4[%c0_4, %c0_5] : memref<1x128xf32, #tpu.memory_space<vmem>>, vector<1x128xf32>
    %8 = vector.broadcast %7 : vector<1x128xf32> to vector<16x128xf32>
    %9 = arith.addf %6, %8 : vector<16x128xf32>
    %cst_6 = arith.constant 0.000000e+00 : f32
    %10 = vector.broadcast %cst_6 : f32 to vector<16x128xf32>
    %11 = arith.maximumf %9, %10 : vector<16x128xf32>
    %c0_7 = arith.constant 0 : index
    %c0_8 = arith.constant 0 : index
    %12 = vector.load %arg8[%c0_7, %c0_8] : memref<16x128xf32, #tpu.memory_space<vmem>>, vector<16x128xf32>
    %13 = arith.truncf %11 : vector<16x128xf32> to vector<16x128xbf16>
    %c0_9 = arith.constant 0 : index
    %c0_10 = arith.constant 0 : index
    %14 = vector.load %arg5[%c0_9, %c0_10] : memref<128x128xbf16, #tpu.memory_space<vmem>>, vector<128x128xbf16>
    %cst_11 = arith.constant dense<0.000000e+00> : vector<16x128xf32>
    %15 = tpu.matmul %13, %14, %cst_11 {dimension_numbers = #tpu.dot_dimension_numbers<[1], [0], [0], [1], [0, 0, 1, 1], [], []>} : vector<16x128xbf16>, vector<128x128xbf16>, vector<16x128xf32> -> vector<16x128xf32>
    %16 = arith.addf %12, %15 : vector<16x128xf32>
    %c0_12 = arith.constant 0 : index
    %c0_13 = arith.constant 0 : index
    %17 = vector.load %arg8[%c0_12, %c0_13] : memref<16x128xf32, #tpu.memory_space<vmem>>, vector<16x128xf32>
    tpu.vector_store %arg8[%c0_12, %c0_13], %16 {strides = array<i32>} : memref<16x128xf32, #tpu.memory_space<vmem>>, vector<16x128xf32>,
    %c0_i32_14 = arith.constant 0 : i32
    %18 = arith.cmpi eq, %arg1, %c0_i32_14 : i32
    %19 = arith.extui %18 : i1 to i32
    %c0_i32_15 = arith.constant 0 : i32
    %20 = arith.cmpi ne, %19, %c0_i32_15 : i32
    scf.if %20 {
      %c0_16 = arith.constant 0 : index
      %c0_17 = arith.constant 0 : index
      %21 = vector.load %arg8[%c0_16, %c0_17] : memref<16x128xf32, #tpu.memory_space<vmem>>, vector<16x128xf32>
      %c0_18 = arith.constant 0 : index
      %c0_19 = arith.constant 0 : index
      %22 = vector.load %arg6[%c0_18, %c0_19] : memref<1x128xf32, #tpu.memory_space<vmem>>, vector<1x128xf32>
      %23 = vector.broadcast %22 : vector<1x128xf32> to vector<16x128xf32>
      %24 = arith.addf %21, %23 : vector<16x128xf32>
      %c0_20 = arith.constant 0 : index
      %c0_21 = arith.constant 0 : index
      %25 = vector.load %arg7[%c0_20, %c0_21] : memref<16x128xf32, #tpu.memory_space<vmem>>, vector<16x128xf32>
      tpu.vector_store %arg7[%c0_20, %c0_21], %24 {strides = array<i32>} : memref<16x128xf32, #tpu.memory_space<vmem>>, vector<16x128xf32>,
    } else {
    }
    return
  }
  func.func @transform_0(%arg0: i32, %arg1: i32) -> (i32, i32) {
    %c0_i32 = arith.constant 0 : i32
    %c0_i32_0 = arith.constant 0 : i32
    return %arg0, %c0_i32 : i32, i32
  }
  func.func @transform_1(%arg0: i32, %arg1: i32) -> (i32, i32) {
    %c0_i32 = arith.constant 0 : i32
    %c0_i32_0 = arith.constant 0 : i32
    return %c0_i32, %arg1 : i32, i32
  }
  func.func @transform_2(%arg0: i32, %arg1: i32) -> (i32, i32) {
    %c0_i32 = arith.constant 0 : i32
    %c0_i32_0 = arith.constant 0 : i32
    return %c0_i32, %arg1 : i32, i32
  }
  func.func @transform_3(%arg0: i32, %arg1: i32) -> (i32, i32) {
    %c0_i32 = arith.constant 0 : i32
    %c0_i32_0 = arith.constant 0 : i32
    return %arg1, %c0_i32 : i32, i32
  }
  func.func @transform_4(%arg0: i32, %arg1: i32) -> (i32, i32) {
    %c0_i32 = arith.constant 0 : i32
    %c0_i32_0 = arith.constant 0 : i32
    %c0_i32_1 = arith.constant 0 : i32
    return %c0_i32, %c0_i32_0 : i32, i32
  }
  func.func @transform_5(%arg0: i32, %arg1: i32) -> (i32, i32) {
    %c0_i32 = arith.constant 0 : i32
    %c0_i32_0 = arith.constant 0 : i32
    return %arg0, %c0_i32 : i32, i32
  }
}

</mosaic_0001>

<bundles_post_ra>
// kernel: tpu_custom_call.1
= control target key start
LH: loop header
LB: loop body
LE: loop exit
PB: predicated region body
PF: predicated region fallthrough
CT: control target
= control target key end

     0   :  { %10 = vsyncpa [#allocation4], 0  ;;  %s511_s0 = inlined_call_operand.hbm [shape: f32[16,32], index: 0, kind: input, shape index: {}]   ;;  %s512_s1 = inlined_call_operand.hbm [shape: bf16[32,128], index: 1, kind: input, shape index: {}]   ;;  %s513_s2 = inlined_call_operand.vmem [shape: f32[1,128], index: 2, kind: input, shape index: {}]   ;;  %s514_s3 = inlined_call_operand.hbm [shape: bf16[128,128], index: 3, kind: input, shape index: {}]   ;;  %s515_s4 = inlined_call_operand.vmem [shape: f32[1,128], index: 4, kind: input, shape index: {}]   ;;  %s516_s5 = inlined_call_operand.hbm [shape: f32[16,128], index: 5, kind: output, shape index: {}]  }
   0x1   :  { %11 = vsyncpa [#allocation7], 0 }
   0x2   :  { %12 = vsyncpa [#allocation5], 0  ;;  %s447_s18 = smov [#allocation6]  }
   0x3   :  { %s30_s19 = sshll.u32 %s447_s18, 4  ;;  %s31_s19 = int_to_ptr.vmem [resolvable:$true] %s30_s19 }
   0x4   :  { %s369_s20 = scalar_lea.vmem %s31_s19, 256  ;;  %p374_p1 = scmp.lt.s32.totalorder %s31_s19, %s31_s19 }
   0x5   :  { %p370_p0 = scmp.ne.s32.totalorder %s31_s19, %s369_s20  ;;  %p375_p2 = scmp.lt.s32.totalorder %s369_s20, %s369_s20 }
   0x7   :  { %p376_p3 = por %p375_p2, %p374_p1 }
   0x9   :  { %p377_p4 = pnand %p376_p3, %p370_p0 }
   0xb   :  { %380 = shalt.err (!%p377_p4)
}
   0xc   :  { %s448_s21 = smov 64   ;;  %s449_s22 = smov 4  }
   0xd   :  { %36 = dma.hbm_to_vmem [thread:$0]  %s512_s1, 256, %s31_s19, [#allocation7], %s448_s21, %s448_s21, %s449_s22  }
   0xe   :  { %s450_s25 = smov [#allocation3]  }
   0xf   :  { %s18_s26 = sshll.u32 %s450_s25, 4  ;;  %s19_s26 = int_to_ptr.vmem [resolvable:$true] %s18_s26 }
  0x10   :  { %s389_s27 = scalar_lea.vmem %s19_s26, 256  ;;  %p394_p6 = scmp.lt.s32.totalorder %s19_s26, %s19_s26 }
  0x11   :  { %p390_p5 = scmp.ne.s32.totalorder %s19_s26, %s389_s27  ;;  %p395_p7 = scmp.lt.s32.totalorder %s389_s27, %s389_s27 }
  0x13   :  { %p396_p8 = por %p395_p7, %p394_p6 }
  0x15   :  { %p397_p9 = pnand %p396_p8, %p390_p5 }
  0x17   :  { %400 = shalt.err (!%p397_p9)
}
  0x18   :  { %s451_s28 = smov 128   ;;  %s452_s29 = smov 8  }
  0x19   :  { %24 = dma.hbm_to_vmem [thread:$0]  %s511_s0, 256, %s19_s26, [#allocation4], %s451_s28, %s451_s28, %s452_s29  }
  0x1a   :  { %s453_s1 = smov [#allocation8]  }
  0x1b   :  { %s44_s7 = sshll.u32 %s453_s1, 4  ;;  %s45_s7 = int_to_ptr.vmem [resolvable:$true] %s44_s7 }
  0x1c   :  { %s409_s8 = scalar_lea.vmem %s45_s7, 1024  ;;  %p414_p11 = scmp.lt.s32.totalorder %s45_s7, %s45_s7 }
  0x1d   :  { %p410_p10 = scmp.ne.s32.totalorder %s45_s7, %s409_s8  ;;  %p415_p12 = scmp.lt.s32.totalorder %s409_s8, %s409_s8 }
  0x1f   :  { %p416_p13 = por %p415_p12, %p414_p11 }
  0x21   :  { %p417_p0 = pnand %p416_p13, %p410_p10 }
  0x23   :  { %420 = shalt.err (!%p417_p0)
}
  0x24   :  { %50 = dma.hbm_to_vmem [thread:$0]  %s514_s3, 1024, %s45_s7, [#allocation7], %s448_s21, %s448_s21, %s449_s22  }
  0x25   :  { %441 = dma.done.wait [#allocation4], 256  }
  0x26   :  { %442 = vsyncadd [#allocation4], 4294967040 }
  0x27   :  { %443 = dma.done.wait [#allocation7], 1280  }
  0x28   :  { %444 = vsyncadd [#allocation7], 4294966016  ;;  %v454_v0 = vmov 0.0   ;;  %vm455_vm0 = vmmov 0   ;;  %v351_v1 = vld [vmem:[#allocation6 + $0x8] sm:$0xff]   ;;  %v352_v2 = vld [vmem:[#allocation6] sm:$0xff]  }
  0x29   :  { %313 = vmatprep.subr.bf16.mxu0 %v454_v0  ;;  %317 = vmatprep.mubr.msk.bf16.mxu0 %vm455_vm0, %v454_v0  ;;  %v69_v3 = vld [vmem:[#allocation3] sm:$0xff]  ;;  %v70_v4 = vld [vmem:[#allocation3 + $0x8] sm:$0xff]  ;;  %v353_v5 = vld [vmem:[#allocation8 + $0x38] sm:$0xff]   ;;  %vm95_vm1 = vcmask 261120   ;;  %s456_s13 = smov [#allocation9]  }
  0x2a   :  { %321 = vmatprep.subr.bf16.mxu1 %v454_v0  ;;  %337 = vmatprep.mubr.msk.bf16.mxu1 %vm455_vm0, %v454_v0  ;;  %v71_v6 = vpack.c.bf16 %v70_v4, %v69_v3  ;;  %v354_v7 = vld [vmem:[#allocation8 + $0x30] sm:$0xff]   ;;  %v355_v8 = vld [vmem:[#allocation8 + $0x28] sm:$0xff]   ;;  %v356_v9 = vld [vmem:[#allocation8 + $0x20] sm:$0xff]   ;;  %s275_s14 = sshll.u32 %s456_s13, 4  ;;  %s276_s14 = int_to_ptr.vmem [resolvable:$true] %s275_s14 }
  0x2b   :  { %314 = vmatpush3.bf16.msra.mxu0 %v351_v1  ;;  %322 = vmatpush3.bf16.msra.mxu1 %v353_v5  ;;  %v357_v10 = vld [vmem:[#allocation8 + $0x18] sm:$0xff]   ;;  %v358_v11 = vld [vmem:[#allocation8 + $0x10] sm:$0xff]   ;;  %v359_v12 = vld [vmem:[#allocation8 + $0x8] sm:$0xff]   ;;  %p426_p2 = scmp.lt.s32.totalorder %s276_s14, %s276_s14 }
  0x2c   :  { %315 = vmatprep.subr.bf16.mxu0 %v454_v0  ;;  %323 = vmatprep.subr.bf16.mxu1 %v454_v0  ;;  %v360_v13 = vld [vmem:[#allocation8] sm:$0xff]  }
  0x2d   :  { %v288_v14 = vld [vmem:[%s513_s2] ss:$0 sm:$0xff]  ;;  %s421_s2 = scalar_lea.vmem %s276_s14, 256 }
  0x2e   :  { %v300_v24 = vld [vmem:[%s515_s4] ss:$0 sm:$0xff]  ;;  %p422_p1 = scmp.ne.s32.totalorder %s276_s14, %s421_s2  ;;  %p427_p3 = scmp.lt.s32.totalorder %s421_s2, %s421_s2 }
  0x2f   :  { %316 = vmatpush3.bf16.msra.mxu0 %v352_v2  ;;  %324 = vmatpush3.bf16.msra.mxu1 %v354_v7 }
  0x30   :  { %325 = vmatprep.subr.bf16.mxu1 %v454_v0  ;;  %p428_p4 = por %p427_p3, %p426_p2 }
  0x32   :  { %318 = vmatmul.mubr.msk.bf16.vlgmr.msra.gmra.mxu0 %vm95_vm1, %v71_v6  ;;  %p429_p5 = pnand %p428_p4, %p422_p1 }
  0x33   :  { %326 = vmatpush3.bf16.msra.mxu1 %v355_v8 }
  0x34   :  { %327 = vmatprep.subr.bf16.mxu1 %v454_v0 }
  0x37   :  { %328 = vmatpush3.bf16.msra.mxu1 %v356_v9 }
  0x38   :  { %329 = vmatprep.subr.bf16.mxu1 %v454_v0 }
  0x3b   :  { %330 = vmatpush3.bf16.msra.mxu1 %v357_v10 }
  0x3c   :  { %331 = vmatprep.subr.bf16.mxu1 %v454_v0 }
  0x3f   :  { %332 = vmatpush3.bf16.msra.mxu1 %v358_v11 }
  0x40   :  { %333 = vmatprep.subr.bf16.mxu1 %v454_v0 }
  0x43   :  { %334 = vmatpush3.bf16.msra.mxu1 %v359_v12 }
  0x44   :  { %335 = vmatprep.subr.bf16.mxu1 %v454_v0 }
  0x47   :  { %336 = vmatpush3.bf16.msra.mxu1 %v360_v13 }
  0xf2   :  { %v133_v15 = vpop.f32.mrf.mxu0 }
  0xf3   :  { %v134_v17 = vadd.f32 %v288_v14, %v133_v15 }
  0xf4   :  { %v319_v16 = vpop.f32.mrf.mxu0 }
  0xf5   :  { %v140_v21 = vmax.f32 %v134_v17, 0.0 }
  0xf6   :  { %v136_v18 = vpop.f32.mrf.mxu0 }
  0xf7   :  { %v137_v19 = vadd.f32 %v288_v14, %v136_v18 }
  0xf8   :  { %v320_v20 = vpop.f32.mrf.mxu0 }
  0xf9   :  { %v141_v22 = vmax.f32 %v137_v19, 0.0 }
  0xfb   :  { %v144_v23 = vpack.c.bf16 %v141_v22, %v140_v21 }
  0xfd   :  { %338 = vmatmul.mubr.bf16.vlgmr.msra.gmra.mxu1 %v144_v23 }
 0x1bd   :  { %v243_v25 = vpop.f32.mrf.mxu1 }
 0x1be   :  { %v266_v26 = vadd.f32 %v300_v24, %v243_v25 }
 0x1bf   :  { %v339_v27 = vpop.f32.mrf.mxu1 }
 0x1c0   :  { %268 = vst [vmem:[#allocation9] sm:$0xff] %v266_v26 }
 0x1c1   :  { %v246_v28 = vpop.f32.mrf.mxu1 }
 0x1c2   :  { %v267_v29 = vadd.f32 %v300_v24, %v246_v28 }
 0x1c3   :  { %v340_v30 = vpop.f32.mrf.mxu1 }
 0x1c4   :  { %269 = vst [vmem:[#allocation9 + $0x8] sm:$0xff] %v267_v29 }
 0x1c5   :  { %432 = shalt.err (!%p429_p5)
}
 0x1c6   :  { %281 = dma.vmem_to_hbm [thread:$0]  %s276_s14, 256, %s516_s5, [#allocation5], %s451_s28, %s451_s28, %s452_s29  }
 0x1c7   :  { %445 = dma.done.wait [#allocation5], 256  }
 0x1c8   :  { %446 = vsyncadd [#allocation5], 4294967040 }
 0x1c9   :  { %285 = vsyncpa [#allocation4], 1 }
 0x1ca   :  { %286 = vsyncpa [#allocation7], 1 }
 0x1cb   :  { %287 = vsyncpa [#allocation5], 1 }

</bundles_post_ra>
